<compile_context>
chip_gen: v6e
topology: v6e:2x2x1
jax: 0.10.0
libtpu: 0.0.40
codegen_flags: <defaults>
</compile_context>

<pallas_src>
import jax
import jax.numpy as jnp
from jax.experimental import pallas as pl
from jax.experimental.pallas import tpu as pltpu


def _round_up(n, m):
    return ((n + m - 1) // m) * m


# ----------------------------- Pallas kernel --------------------------------
def _mlp_kernel(x_ref, w1_ref, b1_ref, w2_ref, b2_ref, w3_ref, b3_ref, out_ref):
    x = x_ref[...]

    # fused layer 1: columns = [critic_h | actor_h]
    h1 = jnp.tanh(
        jnp.dot(x, w1_ref[...], preferred_element_type=jnp.float32) + b1_ref[...]
    )
    # fused layer 2 (block-diagonal): columns = [critic_h | actor_h]
    h2 = jnp.tanh(
        jnp.dot(h1, w2_ref[...], preferred_element_type=jnp.float32) + b2_ref[...]
    )
    # fused layer 3 (block-diagonal): columns = [actor (padded to 128) | value group]
    y3 = jnp.dot(h2, w3_ref[...], preferred_element_type=jnp.float32) + b3_ref[...]

    na_pad = out_ref.shape[-1] - 128            # static; multiple of 128
    out_ref[:, :na_pad] = jnp.tanh(y3[:, :na_pad])   # actor has trailing Tanh
    out_ref[:, na_pad:] = y3[:, na_pad:]             # value column (no Tanh)


# --------------------------- tile / VMEM budgeting ----------------------------
def _choose_batch_tile(batch, in_dim, two_h, n_out, weight_bytes):
    """Pick batch tile tb and a vmem limit.

    (a) per-step VMEM (2x-buffered x/out tiles + intermediates + weights) fits
        comfortably under v7x's 32 MiB scoped default,
    (b) tiles are large (amortize ~0.35us per-grid-step overhead),
    (c) grid has >= 2 steps when the batch allows, so both v7x TCs get work.
    """
    # bytes per batch row held in VMEM at once (f32, 2x buffered x & out tiles,
    # plus h1/h2/y3 intermediates).
    per_row = 4 * (2 * in_dim + 2 * n_out + 2 * two_h + n_out)
    budget = max((24 << 20) - 2 * weight_bytes, 4 << 20)
    tb_vmem = max(8, min(1024, (budget // per_row) // 8 * 8))

    if batch < 16:
        tb = batch                                   # single full-dim block, no padding
    elif batch <= 2 * tb_vmem:
        # split into (at least) 2 tiles; last tile may be ragged.
        tb = min(tb_vmem, _round_up(pl.cdiv(batch, 2), 8))
    else:
        tb = tb_vmem

    vmem_needed = 2 * weight_bytes + per_row * tb + (2 << 20)
    vmem_limit = int(min(48 << 20, max(vmem_needed, 16 << 20)))
    return tb, vmem_limit


# ------------------------------ wrapper --------------------------------------
def micropolis_mlp_forward(inputs, rnn_hxs, masks, fused_params, actor_out_dim):
    """Forward pass of MicropolisBase_mlp (non-recurrent).

    inputs: (B, C, H, W) float32 (NCHW, like PyTorch)
    returns (value (B,1), hidden_actor (B, W*W*num_actions), rnn_hxs)
    """
    # TODO(synk): GRU recurrent path not implemented (module uses recurrent=False).
    B = inputs.shape[0]
    x = inputs.reshape(B, -1).astype(jnp.float32)    # == x.view(x.size(0), -1)

    w1, b1, w2, b2, w3, b3 = fused_params
    in_dim = w1.shape[0]
    two_h = w1.shape[1]
    n_out = w3.shape[1]                              # na_pad + 128 (lane-dense)
    na_pad = n_out - 128
    na = actor_out_dim

    weight_bytes = 4 * int(w1.size + b1.size + w2.size + b2.size + w3.size + b3.size)
    tb, vmem_limit = _choose_batch_tile(B, in_dim, two_h, n_out, weight_bytes)
    grid = (pl.cdiv(B, tb),)

    flops = 2 * B * (in_dim * two_h + two_h * two_h + two_h * n_out)
    transcendentals = B * (2 * two_h + na_pad)
    bytes_accessed = 4 * B * (in_dim + n_out) + weight_bytes

    def _run(single_buffer_weights):
        if single_buffer_weights:
            def wspec(shape):
                return pl.BlockSpec(shape, lambda i: (0, 0),
                                    pipeline_mode=pl.Buffered(1))
        else:
            def wspec(shape):
                return pl.BlockSpec(shape, lambda i: (0, 0))

        return pl.pallas_call(
            _mlp_kernel,
            out_shape=jax.ShapeDtypeStruct((B, n_out), jnp.float32),
            grid_spec=pltpu.PrefetchScalarGridSpec(
                num_scalar_prefetch=0,
                grid=grid,
                in_specs=[
                    pl.BlockSpec((tb, in_dim), lambda i: (i, 0)),   # x tile
                    wspec(w1.shape), wspec(b1.shape),               # resident weights
                    wspec(w2.shape), wspec(b2.shape),
                    wspec(w3.shape), wspec(b3.shape),
                ],
                out_specs=pl.BlockSpec((tb, n_out), lambda i: (i, 0)),
            ),
            compiler_params=pltpu.CompilerParams(
                dimension_semantics=("parallel",),
                vmem_limit_bytes=vmem_limit,
            ),
            cost_estimate=pl.CostEstimate(
                flops=flops,
                transcendentals=transcendentals,
                bytes_accessed=bytes_accessed,
            ),
        )(x, w1, b1, w2, b2, w3, b3)

    try:
        out = _run(True)
    except Exception:
        # pipeline_mode=pl.Buffered(1) unsupported at top-level pallas_call in
        # this JAX version -> fall back to default double-buffered weights.
        out = _run(False)

    value = out[:, na_pad:na_pad + 1]
    actor = out[:, :na]
    return value, actor, rnn_hxs


# --------------------------- parameter init -----------------------------------
def _init_normc(key, out_features, in_features):
    """Replicates init_normc_: N(0,1) then row-normalize (per output unit)."""
    w = jax.random.normal(key, (out_features, in_features), dtype=jnp.float32)
    w = w / jnp.sqrt(jnp.sum(jnp.square(w), axis=1, keepdims=True))
    return w.T                                        # pre-transpose to (in, out)


def make_params(key, num_inputs_flat, hidden_size, actor_out_dim):
    keys = jax.random.split(key, 6)
    # critic
    cw1 = _init_normc(keys[0], hidden_size, num_inputs_flat)
    cb1 = jnp.zeros((1, hidden_size), jnp.float32)
    cw2 = _init_normc(keys[1], hidden_size, hidden_size)
    cb2 = jnp.zeros((1, hidden_size), jnp.float32)
    clw = _init_normc(keys[2], 1, hidden_size)
    clb = jnp.zeros((1, 1), jnp.float32)
    # actor
    aw1 = _init_normc(keys[3], hidden_size, num_inputs_flat)
    ab1 = jnp.zeros((1, hidden_size), jnp.float32)
    aw2 = _init_normc(keys[4], hidden_size, hidden_size)
    ab2 = jnp.zeros((1, hidden_size), jnp.float32)
    aw3 = _init_normc(keys[5], actor_out_dim, hidden_size)
    ab3 = jnp.zeros((1, actor_out_dim), jnp.float32)
    return (cw1, cb1, cw2, cb2, clw, clb, aw1, ab1, aw2, ab2, aw3, ab3)


def fuse_params(params):
    """Fuse critic/actor weights into 3 matrices; pad layer-3 to lane-dense width.

    Layer 1: column-concat  [cw1 | aw1]                           (in, 2H)
    Layer 2: block-diagonal [[cw2, 0], [0, aw2]]                  (2H, 2H)
    Layer 3: block-diagonal, cols = [actor (pad->128k) | value]   (2H, na_pad+128)
    Zero blocks / zero-padded columns contribute exact zeros.
    """
    (cw1, cb1, cw2, cb2, clw, clb, aw1, ab1, aw2, ab2, aw3, ab3) = params
    h = cw1.shape[1]
    na = aw3.shape[1]
    na_pad = _round_up(na, 128)
    n_out = na_pad + 128                              # value gets its own 128-lane group

    w1 = jnp.concatenate([cw1, aw1], axis=1)                     # (in, 2H)
    b1 = jnp.concatenate([cb1, ab1], axis=1)                     # (1, 2H)

    w2 = jnp.zeros((2 * h, 2 * h), jnp.float32)
    w2 = w2.at[:h, :h].set(cw2).at[h:, h:].set(aw2)              # (2H, 2H)
    b2 = jnp.concatenate([cb2, ab2], axis=1)                     # (1, 2H)

    w3 = jnp.zeros((2 * h, n_out), jnp.float32)
    w3 = w3.at[h:, :na].set(aw3).at[:h, na_pad:na_pad + 1].set(clw)
    b3 = jnp.zeros((1, n_out), jnp.float32)
    b3 = b3.at[:, :na].set(ab3).at[:, na_pad:na_pad + 1].set(clb)
    return (w1, b1, w2, b2, w3, b3)


# ------------------------------ reference ------------------------------------
def reference_forward(inputs, params):
    (cw1, cb1, cw2, cb2, clw, clb, aw1, ab1, aw2, ab2, aw3, ab3) = params
    x = inputs.reshape(inputs.shape[0], -1)
    hc = jnp.tanh(x @ cw1 + cb1)
    hc = jnp.tanh(hc @ cw2 + cb2)
    value = hc @ clw + clb
    ha = jnp.tanh(x @ aw1 + ab1)
    ha = jnp.tanh(ha @ aw2 + ab2)
    actor = jnp.tanh(ha @ aw3 + ab3)
    return value, actor


# -------------------------------- main ----------------------------------------
if __name__ == "__main__":
    # small shapes consistent with the module
    batch = 2
    num_inputs = 4       # channels
    map_width = 4        # spatial
    hidden_size = 32
    num_actions = 8

    num_inputs_flat = map_width * map_width * num_inputs        # 64
    actor_out_dim = map_width * map_width * num_actions         # 128

    key = jax.random.PRNGKey(0)
    k_x, k_p = jax.random.split(key)

    inputs = jax.random.normal(
        k_x, (batch, num_inputs, map_width, map_width), dtype=jnp.float32
    )
    rnn_hxs = jnp.zeros((batch, 1), jnp.float32)   # recurrent_hidden_state_size == 1
    masks = jnp.ones((batch, 1), jnp.float32)

    params = make_params(k_p, num_inputs_flat, hidden_size, actor_out_dim)
    fused = fuse_params(params)

    value, actor, rnn_hxs_out = micropolis_mlp_forward(
        inputs, rnn_hxs, masks, fused, actor_out_dim
    )
    jax.block_until_ready((value, actor, rnn_hxs_out))

    # correctness check vs pure-JAX reference (unfused weights).
    # Tolerance allows for TPU f32 dots defaulting to bf16-precision MXU passes.
    value_ref, actor_ref = reference_forward(inputs, params)
    assert value.shape == (batch, 1)
    assert actor.shape == (batch, actor_out_dim)
    assert jnp.allclose(value, value_ref, atol=1e-4, rtol=1e-4)
    assert jnp.allclose(actor, actor_ref, atol=1e-4, rtol=1e-4)

    print("KERNEL_OK")
</pallas_src>

<mosaic_0001>
module attributes {stable_mosaic.version = 11 : i64} {
  func.func @_mlp_kernel(%arg0: i32, %arg1: memref<2x64xf32, #tpu.memory_space<vmem>>, %arg2: memref<64x64xf32, #tpu.memory_space<vmem>>, %arg3: memref<1x64xf32, #tpu.memory_space<vmem>>, %arg4: memref<64x64xf32, #tpu.memory_space<vmem>>, %arg5: memref<1x64xf32, #tpu.memory_space<vmem>>, %arg6: memref<64x256xf32, #tpu.memory_space<vmem>>, %arg7: memref<1x256xf32, #tpu.memory_space<vmem>>, %arg8: memref<2x256xf32, #tpu.memory_space<vmem>>) attributes {dimension_semantics = [#tpu.dimension_semantics<parallel>], iteration_bounds = array<i64: 1>, scalar_prefetch = 0 : i64, scratch_operands = 0 : i64, tpu.core_type = #tpu.core_type<tc>, window_params = [{transform_indices = @transform_0, window_bounds = array<i64: 2, 64>}, {pipeline_mode = #tpu.pipeline_mode<synchronous>, transform_indices = @transform_1, window_bounds = array<i64: 64, 64>}, {pipeline_mode = #tpu.pipeline_mode<synchronous>, transform_indices = @transform_2, window_bounds = array<i64: 1, 64>}, {pipeline_mode = #tpu.pipeline_mode<synchronous>, transform_indices = @transform_3, window_bounds = array<i64: 64, 64>}, {pipeline_mode = #tpu.pipeline_mode<synchronous>, transform_indices = @transform_4, window_bounds = array<i64: 1, 64>}, {pipeline_mode = #tpu.pipeline_mode<synchronous>, transform_indices = @transform_5, window_bounds = array<i64: 64, 256>}, {pipeline_mode = #tpu.pipeline_mode<synchronous>, transform_indices = @transform_6, window_bounds = array<i64: 1, 256>}, {transform_indices = @transform_7, window_bounds = array<i64: 2, 256>}]} {
    %c0 = arith.constant 0 : index
    %c0_0 = arith.constant 0 : index
    %0 = vector.load %arg1[%c0, %c0_0] : memref<2x64xf32, #tpu.memory_space<vmem>>, vector<2x64xf32>
    %c0_1 = arith.constant 0 : index
    %c0_2 = arith.constant 0 : index
    %1 = vector.load %arg2[%c0_1, %c0_2] : memref<64x64xf32, #tpu.memory_space<vmem>>, vector<64x64xf32>
    %cst = arith.constant dense<0.000000e+00> : vector<2x64xf32>
    %2 = tpu.matmul %0, %1, %cst {dimension_numbers = #tpu.dot_dimension_numbers<[1], [0], [0], [1], [0, 0, 1, 1], [], []>} : vector<2x64xf32>, vector<64x64xf32>, vector<2x64xf32> -> vector<2x64xf32>
    %c0_3 = arith.constant 0 : index
    %c0_4 = arith.constant 0 : index
    %3 = vector.load %arg3[%c0_3, %c0_4] : memref<1x64xf32, #tpu.memory_space<vmem>>, vector<1x64xf32>
    %4 = vector.broadcast %3 : vector<1x64xf32> to vector<2x64xf32>
    %5 = arith.addf %2, %4 : vector<2x64xf32>
    %6 = math.tanh %5 : vector<2x64xf32>
    %c0_5 = arith.constant 0 : index
    %c0_6 = arith.constant 0 : index
    %7 = vector.load %arg4[%c0_5, %c0_6] : memref<64x64xf32, #tpu.memory_space<vmem>>, vector<64x64xf32>
    %cst_7 = arith.constant dense<0.000000e+00> : vector<2x64xf32>
    %8 = tpu.matmul %6, %7, %cst_7 {dimension_numbers = #tpu.dot_dimension_numbers<[1], [0], [0], [1], [0, 0, 1, 1], [], []>} : vector<2x64xf32>, vector<64x64xf32>, vector<2x64xf32> -> vector<2x64xf32>
    %c0_8 = arith.constant 0 : index
    %c0_9 = arith.constant 0 : index
    %9 = vector.load %arg5[%c0_8, %c0_9] : memref<1x64xf32, #tpu.memory_space<vmem>>, vector<1x64xf32>
    %10 = vector.broadcast %9 : vector<1x64xf32> to vector<2x64xf32>
    %11 = arith.addf %8, %10 : vector<2x64xf32>
    %12 = math.tanh %11 : vector<2x64xf32>
    %c0_10 = arith.constant 0 : index
    %c0_11 = arith.constant 0 : index
    %13 = vector.load %arg6[%c0_10, %c0_11] : memref<64x256xf32, #tpu.memory_space<vmem>>, vector<64x256xf32>
    %cst_12 = arith.constant dense<0.000000e+00> : vector<2x256xf32>
    %14 = tpu.matmul %12, %13, %cst_12 {dimension_numbers = #tpu.dot_dimension_numbers<[1], [0], [0], [1], [0, 0, 1, 1], [], []>} : vector<2x64xf32>, vector<64x256xf32>, vector<2x256xf32> -> vector<2x256xf32>
    %c0_13 = arith.constant 0 : index
    %c0_14 = arith.constant 0 : index
    %15 = vector.load %arg7[%c0_13, %c0_14] : memref<1x256xf32, #tpu.memory_space<vmem>>, vector<1x256xf32>
    %16 = vector.broadcast %15 : vector<1x256xf32> to vector<2x256xf32>
    %17 = arith.addf %14, %16 : vector<2x256xf32>
    %18 = vector.extract_strided_slice %17 {offsets = [0, 0], sizes = [2, 128], strides = [1, 1]} : vector<2x256xf32> to vector<2x128xf32>
    %19 = math.tanh %18 : vector<2x128xf32>
    %c0_15 = arith.constant 0 : index
    %c0_16 = arith.constant 0 : index
    %20 = vector.load %arg8[%c0_15, %c0_16] : memref<2x256xf32, #tpu.memory_space<vmem>>, vector<2x128xf32>
    tpu.vector_store %arg8[%c0_15, %c0_16], %19 {strides = array<i32>} : memref<2x256xf32, #tpu.memory_space<vmem>>, vector<2x128xf32>,
    %21 = vector.extract_strided_slice %17 {offsets = [0, 128], sizes = [2, 128], strides = [1, 1]} : vector<2x256xf32> to vector<2x128xf32>
    %c0_17 = arith.constant 0 : index
    %c128 = arith.constant 128 : index
    %22 = vector.load %arg8[%c0_17, %c128] : memref<2x256xf32, #tpu.memory_space<vmem>>, vector<2x128xf32>
    tpu.vector_store %arg8[%c0_17, %c128], %21 {strides = array<i32>} : memref<2x256xf32, #tpu.memory_space<vmem>>, vector<2x128xf32>,
    return
  }
  func.func @transform_0(%arg0: i32) -> (i32, i32) {
    %c0_i32 = arith.constant 0 : i32
    %c0_i32_0 = arith.constant 0 : i32
    return %arg0, %c0_i32 : i32, i32
  }
  func.func @transform_1(%arg0: i32) -> (i32, i32) {
    %c0_i32 = arith.constant 0 : i32
    %c0_i32_0 = arith.constant 0 : i32
    %c0_i32_1 = arith.constant 0 : i32
    return %c0_i32, %c0_i32_0 : i32, i32
  }
  func.func @transform_2(%arg0: i32) -> (i32, i32) {
    %c0_i32 = arith.constant 0 : i32
    %c0_i32_0 = arith.constant 0 : i32
    %c0_i32_1 = arith.constant 0 : i32
    return %c0_i32, %c0_i32_0 : i32, i32
  }
  func.func @transform_3(%arg0: i32) -> (i32, i32) {
    %c0_i32 = arith.constant 0 : i32
    %c0_i32_0 = arith.constant 0 : i32
    %c0_i32_1 = arith.constant 0 : i32
    return %c0_i32, %c0_i32_0 : i32, i32
  }
  func.func @transform_4(%arg0: i32) -> (i32, i32) {
    %c0_i32 = arith.constant 0 : i32
    %c0_i32_0 = arith.constant 0 : i32
    %c0_i32_1 = arith.constant 0 : i32
    return %c0_i32, %c0_i32_0 : i32, i32
  }
  func.func @transform_5(%arg0: i32) -> (i32, i32) {
    %c0_i32 = arith.constant 0 : i32
    %c0_i32_0 = arith.constant 0 : i32
    %c0_i32_1 = arith.constant 0 : i32
    return %c0_i32, %c0_i32_0 : i32, i32
  }
  func.func @transform_6(%arg0: i32) -> (i32, i32) {
    %c0_i32 = arith.constant 0 : i32
    %c0_i32_0 = arith.constant 0 : i32
    %c0_i32_1 = arith.constant 0 : i32
    return %c0_i32, %c0_i32_0 : i32, i32
  }
  func.func @transform_7(%arg0: i32) -> (i32, i32) {
    %c0_i32 = arith.constant 0 : i32
    %c0_i32_0 = arith.constant 0 : i32
    return %arg0, %c0_i32 : i32, i32
  }
}

module attributes {stable_mosaic.version = 11 : i64} {
  func.func @_mlp_kernel(%arg0: i32, %arg1: memref<2x64xf32, #tpu.memory_space<vmem>>, %arg2: memref<64x64xf32, #tpu.memory_space<vmem>>, %arg3: memref<1x64xf32, #tpu.memory_space<vmem>>, %arg4: memref<64x64xf32, #tpu.memory_space<vmem>>, %arg5: memref<1x64xf32, #tpu.memory_space<vmem>>, %arg6: memref<64x256xf32, #tpu.memory_space<vmem>>, %arg7: memref<1x256xf32, #tpu.memory_space<vmem>>, %arg8: memref<2x256xf32, #tpu.memory_space<vmem>>) attributes {dimension_semantics = [#tpu.dimension_semantics<parallel>], iteration_bounds = array<i64: 1>, scalar_prefetch = 0 : i64, scratch_operands = 0 : i64, tpu.core_type = #tpu.core_type<tc>, window_params = [{transform_indices = @transform_0, window_bounds = array<i64: 2, 64>}, {pipeline_mode = #tpu.pipeline_mode<synchronous>, transform_indices = @transform_1, window_bounds = array<i64: 64, 64>}, {pipeline_mode = #tpu.pipeline_mode<synchronous>, transform_indices = @transform_2, window_bounds = array<i64: 1, 64>}, {pipeline_mode = #tpu.pipeline_mode<synchronous>, transform_indices = @transform_3, window_bounds = array<i64: 64, 64>}, {pipeline_mode = #tpu.pipeline_mode<synchronous>, transform_indices = @transform_4, window_bounds = array<i64: 1, 64>}, {pipeline_mode = #tpu.pipeline_mode<synchronous>, transform_indices = @transform_5, window_bounds = array<i64: 64, 256>}, {pipeline_mode = #tpu.pipeline_mode<synchronous>, transform_indices = @transform_6, window_bounds = array<i64: 1, 256>}, {transform_indices = @transform_7, window_bounds = array<i64: 2, 256>}]} {
    %c0 = arith.constant 0 : index
    %c0_0 = arith.constant 0 : index
    %0 = vector.load %arg1[%c0, %c0_0] : memref<2x64xf32, #tpu.memory_space<vmem>>, vector<2x64xf32>
    %c0_1 = arith.constant 0 : index
    %c0_2 = arith.constant 0 : index
    %1 = vector.load %arg2[%c0_1, %c0_2] : memref<64x64xf32, #tpu.memory_space<vmem>>, vector<64x64xf32>
    %cst = arith.constant dense<0.000000e+00> : vector<2x64xf32>
    %2 = tpu.matmul %0, %1, %cst {dimension_numbers = #tpu.dot_dimension_numbers<[1], [0], [0], [1], [0, 0, 1, 1], [], []>} : vector<2x64xf32>, vector<64x64xf32>, vector<2x64xf32> -> vector<2x64xf32>
    %c0_3 = arith.constant 0 : index
    %c0_4 = arith.constant 0 : index
    %3 = vector.load %arg3[%c0_3, %c0_4] : memref<1x64xf32, #tpu.memory_space<vmem>>, vector<1x64xf32>
    %4 = vector.broadcast %3 : vector<1x64xf32> to vector<2x64xf32>
    %5 = arith.addf %2, %4 : vector<2x64xf32>
    %6 = math.tanh %5 : vector<2x64xf32>
    %c0_5 = arith.constant 0 : index
    %c0_6 = arith.constant 0 : index
    %7 = vector.load %arg4[%c0_5, %c0_6] : memref<64x64xf32, #tpu.memory_space<vmem>>, vector<64x64xf32>
    %cst_7 = arith.constant dense<0.000000e+00> : vector<2x64xf32>
    %8 = tpu.matmul %6, %7, %cst_7 {dimension_numbers = #tpu.dot_dimension_numbers<[1], [0], [0], [1], [0, 0, 1, 1], [], []>} : vector<2x64xf32>, vector<64x64xf32>, vector<2x64xf32> -> vector<2x64xf32>
    %c0_8 = arith.constant 0 : index
    %c0_9 = arith.constant 0 : index
    %9 = vector.load %arg5[%c0_8, %c0_9] : memref<1x64xf32, #tpu.memory_space<vmem>>, vector<1x64xf32>
    %10 = vector.broadcast %9 : vector<1x64xf32> to vector<2x64xf32>
    %11 = arith.addf %8, %10 : vector<2x64xf32>
    %12 = math.tanh %11 : vector<2x64xf32>
    %c0_10 = arith.constant 0 : index
    %c0_11 = arith.constant 0 : index
    %13 = vector.load %arg6[%c0_10, %c0_11] : memref<64x256xf32, #tpu.memory_space<vmem>>, vector<64x256xf32>
    %cst_12 = arith.constant dense<0.000000e+00> : vector<2x256xf32>
    %14 = tpu.matmul %12, %13, %cst_12 {dimension_numbers = #tpu.dot_dimension_numbers<[1], [0], [0], [1], [0, 0, 1, 1], [], []>} : vector<2x64xf32>, vector<64x256xf32>, vector<2x256xf32> -> vector<2x256xf32>
    %c0_13 = arith.constant 0 : index
    %c0_14 = arith.constant 0 : index
    %15 = vector.load %arg7[%c0_13, %c0_14] : memref<1x256xf32, #tpu.memory_space<vmem>>, vector<1x256xf32>
    %16 = vector.broadcast %15 : vector<1x256xf32> to vector<2x256xf32>
    %17 = arith.addf %14, %16 : vector<2x256xf32>
    %18 = vector.extract_strided_slice %17 {offsets = [0, 0], sizes = [2, 128], strides = [1, 1]} : vector<2x256xf32> to vector<2x128xf32>
    %19 = math.tanh %18 : vector<2x128xf32>
    %c0_15 = arith.constant 0 : index
    %c0_16 = arith.constant 0 : index
    %20 = vector.load %arg8[%c0_15, %c0_16] : memref<2x256xf32, #tpu.memory_space<vmem>>, vector<2x128xf32>
    tpu.vector_store %arg8[%c0_15, %c0_16], %19 {strides = array<i32>} : memref<2x256xf32, #tpu.memory_space<vmem>>, vector<2x128xf32>,
    %21 = vector.extract_strided_slice %17 {offsets = [0, 128], sizes = [2, 128], strides = [1, 1]} : vector<2x256xf32> to vector<2x128xf32>
    %c0_17 = arith.constant 0 : index
    %c128 = arith.constant 128 : index
    %22 = vector.load %arg8[%c0_17, %c128] : memref<2x256xf32, #tpu.memory_space<vmem>>, vector<2x128xf32>
    tpu.vector_store %arg8[%c0_17, %c128], %21 {strides = array<i32>} : memref<2x256xf32, #tpu.memory_space<vmem>>, vector<2x128xf32>,
    return
  }
  func.func @transform_0(%arg0: i32) -> (i32, i32) {
    %c0_i32 = arith.constant 0 : i32
    %c0_i32_0 = arith.constant 0 : i32
    return %arg0, %c0_i32 : i32, i32
  }
  func.func @transform_1(%arg0: i32) -> (i32, i32) {
    %c0_i32 = arith.constant 0 : i32
    %c0_i32_0 = arith.constant 0 : i32
    %c0_i32_1 = arith.constant 0 : i32
    return %c0_i32, %c0_i32_0 : i32, i32
  }
  func.func @transform_2(%arg0: i32) -> (i32, i32) {
    %c0_i32 = arith.constant 0 : i32
    %c0_i32_0 = arith.constant 0 : i32
    %c0_i32_1 = arith.constant 0 : i32
    return %c0_i32, %c0_i32_0 : i32, i32
  }
  func.func @transform_3(%arg0: i32) -> (i32, i32) {
    %c0_i32 = arith.constant 0 : i32
    %c0_i32_0 = arith.constant 0 : i32
    %c0_i32_1 = arith.constant 0 : i32
    return %c0_i32, %c0_i32_0 : i32, i32
  }
  func.func @transform_4(%arg0: i32) -> (i32, i32) {
    %c0_i32 = arith.constant 0 : i32
    %c0_i32_0 = arith.constant 0 : i32
    %c0_i32_1 = arith.constant 0 : i32
    return %c0_i32, %c0_i32_0 : i32, i32
  }
  func.func @transform_5(%arg0: i32) -> (i32, i32) {
    %c0_i32 = arith.constant 0 : i32
    %c0_i32_0 = arith.constant 0 : i32
    %c0_i32_1 = arith.constant 0 : i32
    return %c0_i32, %c0_i32_0 : i32, i32
  }
  func.func @transform_6(%arg0: i32) -> (i32, i32) {
    %c0_i32 = arith.constant 0 : i32
    %c0_i32_0 = arith.constant 0 : i32
    %c0_i32_1 = arith.constant 0 : i32
    return %c0_i32, %c0_i32_0 : i32, i32
  }
  func.func @transform_7(%arg0: i32) -> (i32, i32) {
    %c0_i32 = arith.constant 0 : i32
    %c0_i32_0 = arith.constant 0 : i32
    return %arg0, %c0_i32 : i32, i32
  }
}

</mosaic_0001>

<bundles_post_ra>
// kernel: tpu_custom_call.1
= control target key start
LH: loop header
LB: loop body
LE: loop exit
PB: predicated region body
PF: predicated region fallthrough
CT: control target
= control target key end

     0   :  { %12 = vsyncpa [#allocation3], 0  ;;  %s646_s0 = inlined_call_operand.hbm [shape: f32[2,64], index: 0, kind: input, shape index: {}]   ;;  %s647_s1 = inlined_call_operand.hbm [shape: f32[64,64], index: 1, kind: input, shape index: {}]   ;;  %s648_s2 = inlined_call_operand.vmem [shape: f32[1,64], index: 2, kind: input, shape index: {}]   ;;  %s649_s3 = inlined_call_operand.hbm [shape: f32[64,64], index: 3, kind: input, shape index: {}]   ;;  %s650_s4 = inlined_call_operand.vmem [shape: f32[1,64], index: 4, kind: input, shape index: {}]   ;;  %s651_s5 = inlined_call_operand.hbm [shape: f32[64,256], index: 5, kind: input, shape index: {}]   ;;  %s652_s6 = inlined_call_operand.vmem [shape: f32[1,256], index: 6, kind: input, shape index: {}]   ;;  %s653_s7 = inlined_call_operand.hbm [shape: f32[2,256], index: 7, kind: output, shape index: {}]  }
   0x1   :  { %13 = vsyncpa [#allocation6], 0 }
   0x2   :  { %14 = vsyncpa [#allocation9], 0 }
   0x3   :  { %15 = vsyncpa [#allocation4], 0  ;;  %s568_s24 = smov [#allocation5]  }
   0x4   :  { %s31_s25 = sshll.u32 %s568_s24, 4  ;;  %s32_s25 = int_to_ptr.vmem [resolvable:$true] %s31_s25 }
   0x5   :  { %s468_s26 = scalar_lea.vmem %s32_s25, 1024  ;;  %p473_p1 = scmp.lt.s32.totalorder %s32_s25, %s32_s25 }
   0x6   :  { %p469_p0 = scmp.ne.s32.totalorder %s32_s25, %s468_s26  ;;  %p474_p2 = scmp.lt.s32.totalorder %s468_s26, %s468_s26 }
   0x8   :  { %p475_p3 = por %p474_p2, %p473_p1 }
   0xa   :  { %p476_p4 = pnand %p475_p3, %p469_p0 }
   0xc   :  { %479 = shalt.err (!%p476_p4)
}
   0xd   :  { %s569_s27 = smov 128   ;;  %s570_s28 = smov 8  }
   0xe   :  { %37 = dma.hbm_to_vmem [thread:$0]  %s647_s1, 1024, %s32_s25, [#allocation6], %s569_s27, %s569_s27, %s570_s28  }
   0xf   :  { %s571_s8 = smov [#allocation2]   ;;  %s572_s10 = smov [#allocation7]  }
  0x10   :  { %s22_s9 = sshll.u32 %s571_s8, 4  ;;  %s45_s11 = sshll.u32 %s572_s10, 4  ;;  %s23_s9 = int_to_ptr.vmem [resolvable:$true] %s22_s9  ;;  %s46_s11 = int_to_ptr.vmem [resolvable:$true] %s45_s11 }
  0x11   :  { %s488_s12 = scalar_lea.vmem %s23_s9, 32  ;;  %p493_p6 = scmp.lt.s32.totalorder %s23_s9, %s23_s9 }
  0x12   :  { %p489_p5 = scmp.ne.s32.totalorder %s23_s9, %s488_s12  ;;  %p494_p7 = scmp.lt.s32.totalorder %s488_s12, %s488_s12 }
  0x14   :  { %p495_p8 = por %p494_p7, %p493_p6 }
  0x16   :  { %p496_p9 = pnand %p495_p8, %p489_p5 }
  0x18   :  { %499 = shalt.err (!%p496_p9)
}
  0x19   :  { %25 = dma.hbm_to_vmem [thread:$0]  %s646_s0, 32, %s23_s9, [#allocation3]  }
  0x1a   :  { %s508_s15 = scalar_lea.vmem %s46_s11, 1024  ;;  %p513_p11 = scmp.lt.s32.totalorder %s46_s11, %s46_s11 }
  0x1b   :  { %p509_p10 = scmp.ne.s32.totalorder %s46_s11, %s508_s15  ;;  %p514_p12 = scmp.lt.s32.totalorder %s508_s15, %s508_s15 }
  0x1d   :  { %p515_p13 = por %p514_p12, %p513_p11 }
  0x1f   :  { %p516_p0 = pnand %p515_p13, %p509_p10 }
  0x21   :  { %519 = shalt.err (!%p516_p0)
}
  0x22   :  { %51 = dma.hbm_to_vmem [thread:$0]  %s649_s3, 1024, %s46_s11, [#allocation6], %s569_s27, %s569_s27, %s570_s28  }
  0x23   :  { %s573_s17 = smov [#allocation8]  }
  0x24   :  { %s59_s18 = sshll.u32 %s573_s17, 4  ;;  %s60_s18 = int_to_ptr.vmem [resolvable:$true] %s59_s18 }
  0x25   :  { %s528_s19 = scalar_lea.vmem %s60_s18, 2048  ;;  %p533_p2 = scmp.lt.s32.totalorder %s60_s18, %s60_s18 }
  0x26   :  { %p529_p1 = scmp.ne.s32.totalorder %s60_s18, %s528_s19  ;;  %p534_p3 = scmp.lt.s32.totalorder %s528_s19, %s528_s19 }
  0x28   :  { %p535_p4 = por %p534_p3, %p533_p2 }
  0x2a   :  { %p536_p5 = pnand %p535_p4, %p529_p1 }
  0x2c   :  { %539 = shalt.err (!%p536_p5)
}
  0x2d   :  { %s574_s0 = smov 256   ;;  %s575_s20 = smov 16  }
  0x2e   :  { %65 = dma.hbm_to_vmem [thread:$0]  %s651_s5, 2048, %s60_s18, [#allocation9], %s574_s0, %s574_s0, %s575_s20  }
  0x2f   :  { %560 = dma.done.wait [#allocation3], 32  }
  0x30   :  { %561 = vsyncadd [#allocation3], 4294967264 }
  0x31   :  { %562 = dma.done.wait [#allocation6], 2048  }
  0x32   :  { %563 = vsyncadd [#allocation6], 4294965248 }
  0x33   :  { %564 = dma.done.wait [#allocation9], 2048  }
  0x34   :  { %565 = vsyncadd [#allocation9], 4294965248  ;;  %v576_v0 = vmov 0.0   ;;  %vm577_vm0 = vmmov 0   ;;  %v88_v1 = vld [vmem:[#allocation5 + $0x38] sm:$0xff]  ;;  %v87_v2 = vld [vmem:[#allocation5 + $0x30] sm:$0xff]  ;;  %v278_v44 = vlaneseq }
  0x35   :  { %405 = vmatprep.subr.mxu0 %v576_v0  ;;  %421 = vmatprep.mubr.msk.f32.mxu0 %vm577_vm0, %v576_v0  ;;  %v86_v3 = vld [vmem:[#allocation5 + $0x28] sm:$0xff]  ;;  %v85_v4 = vld [vmem:[#allocation5 + $0x20] sm:$0xff]  ;;  %v84_v5 = vld [vmem:[#allocation5 + $0x18] sm:$0xff]  ;;  %vm96_vm1 = vcmask 523264  }
  0x36   :  { %424 = vmatprep.subr.mxu1 %v576_v0  ;;  %440 = vmatprep.mubr.msk.f32.mxu1 %vm577_vm0, %v576_v0  ;;  %v83_v6 = vld [vmem:[#allocation5 + $0x10] sm:$0xff]  ;;  %v82_v7 = vld [vmem:[#allocation5 + $0x8] sm:$0xff]  ;;  %v81_v8 = vld [vmem:[#allocation5] sm:$0xff]  ;;  %v279_v45 = vshrl.u32 %v278_v44, 7 }
  0x37   :  { %406 = vmatpush3.msra.mxu0 %v88_v1  ;;  %v80_v9 = vld [vmem:[#allocation2] sm:$0x3]  ;;  %v177_v11 = vld [vmem:[#allocation7 + $0x30] sm:$0xff]  ;;  %v176_v12 = vld [vmem:[#allocation7 + $0x28] sm:$0xff] }
  0x38   :  { %407 = vmatprep.subr.mxu0 %v576_v0  ;;  %v178_v10 = vld [vmem:[#allocation7 + $0x38] sm:$0xff]  ;;  %v175_v13 = vld [vmem:[#allocation7 + $0x20] sm:$0xff]  ;;  %v173_v15 = vld [vmem:[#allocation7 + $0x10] sm:$0xff]  ;;  %v280_v46 = vsub.s32 0, %v279_v45  ;;  %v284_v48 = vsub.s32 1, %v279_v45 }
  0x39   :  { %408 = vmatpush3.msra.mxu0 %v87_v2  ;;  %425 = vmatpush3.msra.mxu1 %v178_v10  ;;  %v174_v14 = vld [vmem:[#allocation7 + $0x18] sm:$0xff]  ;;  %v172_v16 = vld [vmem:[#allocation7 + $0x8] sm:$0xff]  ;;  %v171_v17 = vld [vmem:[#allocation7] sm:$0xff] }
  0x3a   :  { %409 = vmatprep.subr.mxu0 %v576_v0  ;;  %426 = vmatprep.subr.mxu1 %v576_v0  ;;  %v382_v18 = vld [vmem:[%s648_s2] ss:$0 sm:$0xff]  ;;  %v274_v24 = vld [vmem:[#allocation8 + $0x70] sm:$0xff]  ;;  %v273_v25 = vld [vmem:[#allocation8 + $0x68] sm:$0xff] }
  0x3b   :  { %410 = vmatpush3.msra.mxu0 %v86_v3  ;;  %427 = vmatpush3.msra.mxu1 %v177_v11  ;;  %v275_v23 = vld [vmem:[#allocation8 + $0x78] sm:$0xff]  ;;  %v272_v26 = vld [vmem:[#allocation8 + $0x60] sm:$0xff]  ;;  %v270_v28 = vld [vmem:[#allocation8 + $0x50] sm:$0xff] }
  0x3c   :  { %411 = vmatprep.subr.mxu0 %v576_v0  ;;  %428 = vmatprep.subr.mxu1 %v576_v0  ;;  %v271_v27 = vld [vmem:[#allocation8 + $0x58] sm:$0xff]  ;;  %v269_v29 = vld [vmem:[#allocation8 + $0x48] sm:$0xff]  ;;  %v268_v30 = vld [vmem:[#allocation8 + $0x40] sm:$0xff] }
  0x3d   :  { %412 = vmatpush3.msra.mxu0 %v85_v4  ;;  %429 = vmatpush3.msra.mxu1 %v176_v12  ;;  %v267_v31 = vld [vmem:[#allocation8 + $0x38] sm:$0xff]  ;;  %v266_v32 = vld [vmem:[#allocation8 + $0x30] sm:$0xff]  ;;  %v265_v33 = vld [vmem:[#allocation8 + $0x28] sm:$0xff] }
  0x3e   :  { %413 = vmatprep.subr.mxu0 %v576_v0  ;;  %430 = vmatprep.subr.mxu1 %v576_v0  ;;  %v264_v34 = vld [vmem:[#allocation8 + $0x20] sm:$0xff]  ;;  %v263_v35 = vld [vmem:[#allocation8 + $0x18] sm:$0xff]  ;;  %v262_v36 = vld [vmem:[#allocation8 + $0x10] sm:$0xff] }
  0x3f   :  { %414 = vmatpush3.msra.mxu0 %v84_v5  ;;  %431 = vmatpush3.msra.mxu1 %v175_v13  ;;  %v261_v37 = vld [vmem:[#allocation8 + $0x8] sm:$0xff]  ;;  %v260_v38 = vld [vmem:[#allocation8] sm:$0xff]  ;;  %v384_v39 = vld [vmem:[%s650_s4] ss:$0 sm:$0xff]  ;;  %s578_s4 = smov [#allocation10]  }
  0x40   :  { %415 = vmatprep.subr.mxu0 %v576_v0  ;;  %432 = vmatprep.subr.mxu1 %v576_v0  ;;  %v276_v47 = vld [vmem:[%s652_s6] sm:$0x3]  ;;  %s371_s26 = sshll.u32 %s578_s4, 4  ;;  %s372_s26 = int_to_ptr.vmem [resolvable:$true] %s371_s26 }
  0x41   :  { %416 = vmatpush3.msra.mxu0 %v83_v6  ;;  %433 = vmatpush3.msra.mxu1 %v174_v14  ;;  %v281_v49 = vrot.slane %v276_v47, %v280_v46  ;;  %v285_v50 = vrot.slane %v276_v47, %v284_v48  ;;  %s540_s27 = scalar_lea.vmem %s372_s26, 64  ;;  %p545_p7 = scmp.lt.s32.totalorder %s372_s26, %s372_s26 }
  0x42   :  { %417 = vmatprep.subr.mxu0 %v576_v0  ;;  %434 = vmatprep.subr.mxu1 %v576_v0  ;;  %p541_p6 = scmp.ne.s32.totalorder %s372_s26, %s540_s27  ;;  %p546_p8 = scmp.lt.s32.totalorder %s540_s27, %s540_s27 }
  0x43   :  { %418 = vmatpush3.msra.mxu0 %v82_v7  ;;  %435 = vmatpush3.msra.mxu1 %v173_v15 }
  0x44   :  { %419 = vmatprep.subr.mxu0 %v576_v0  ;;  %436 = vmatprep.subr.mxu1 %v576_v0  ;;  %p547_p9 = por %p546_p8, %p545_p7 }
  0x45   :  { %420 = vmatpush3.msra.mxu0 %v81_v8  ;;  %437 = vmatpush3.msra.mxu1 %v172_v16 }
  0x46   :  { %422 = vmatmul.mubr.msk.f32.vlgmr.msra.gmra.mxu0 %vm96_vm1, %v80_v9  ;;  %438 = vmatprep.subr.mxu1 %v576_v0  ;;  %p548_p10 = pnand %p547_p9, %p541_p6 }
  0x47   :  { %355 = vmatprep.mubr.f32.mxu0 %v576_v0  ;;  %439 = vmatpush3.msra.mxu1 %v171_v17 }
  0x48   :  { %307 = vmatprep.subr.mxu0 %v275_v23 }
  0x49   :  { %308 = vmatpush1.msra.mxu0 %v274_v24 }
  0x4a   :  { %309 = vmatprep.subr.mxu0 %v273_v25 }
  0x4b   :  { %310 = vmatpush1.msra.mxu0 %v272_v26 }
  0x4c   :  { %311 = vmatprep.subr.mxu0 %v271_v27 }
  0x4d   :  { %312 = vmatpush1.msra.mxu0 %v270_v28 }
  0x4e   :  { %313 = vmatprep.subr.mxu0 %v269_v29 }
  0x4f   :  { %314 = vmatpush1.msra.mxu0 %v268_v30 }
  0x50   :  { %315 = vmatprep.subr.mxu0 %v267_v31 }
  0x51   :  { %316 = vmatpush1.msra.mxu0 %v266_v32 }
  0x52   :  { %317 = vmatprep.subr.mxu0 %v265_v33 }
  0x53   :  { %318 = vmatpush1.msra.mxu0 %v264_v34 }
  0x54   :  { %319 = vmatprep.subr.mxu0 %v263_v35 }
  0x55   :  { %320 = vmatpush1.msra.mxu0 %v262_v36 }
  0x56   :  { %321 = vmatprep.subr.mxu0 %v261_v37 }
  0x57   :  { %322 = vmatpush1.msra.mxu0 %v260_v38 }
 0x106   :  { %v166_v19 = vpop.f32.mrf.mxu0 }
 0x107   :  { %v167_v20 = vadd.f32 %v382_v18, %v166_v19 }
 0x108   :  { %v423_v21 = vpop.f32.mrf.mxu0 }
 0x109   :  { %454 = vtanh.f32 %v167_v20 }
 0x116   :  { %v455_v22 = vpop.eup %454 }
 0x117   :  { %441 = vmatmul.mubr.msk.f32.vlgmr.msra.gmra.mxu1 %vm96_vm1, %v455_v22 }
 0x1d7   :  { %v255_v40 = vpop.f32.mrf.mxu1 }
 0x1d8   :  { %v256_v41 = vadd.f32 %v384_v39, %v255_v40 }
 0x1d9   :  { %v442_v42 = vpop.f32.mrf.mxu1 }
 0x1da   :  { %456 = vtanh.f32 %v256_v41 }
 0x1e7   :  { %v457_v43 = vpop.eup %456 }
 0x1e8   :  { %386 = vmatmul.mubr.msk.f32.vlgmr.msra.gmra.mxu0 %vm96_vm1, %v457_v43 }
 0x2a8   :  { %v357_v51 = vpop.f32.mrf.mxu0 }
 0x2a9   :  { %v358_v52 = vadd.f32 %v357_v51, %v281_v49 }
 0x2aa   :  { %v359_v53 = vpop.f32.mrf.mxu0 }
 0x2ab   :  { %458 = vtanh.f32 %v358_v52  ;;  %v360_v54 = vadd.f32 %v359_v53, %v285_v50 }
 0x2ad   :  { %364 = vst [vmem:[#allocation10 + $0x2] sm:$0x3] %v360_v54 }
 0x2b8   :  { %v459_v55 = vpop.eup %458 }
 0x2b9   :  { %363 = vst [vmem:[#allocation10] sm:$0x3] %v459_v55 }
 0x2ba   :  { %551 = shalt.err (!%p548_p10)
}
 0x2bb   :  { %374 = dma.vmem_to_hbm [thread:$0]  %s372_s26, 64, %s653_s7, [#allocation4]  }
 0x2bc   :  { %566 = dma.done.wait [#allocation4], 64  }
 0x2bd   :  { %567 = vsyncadd [#allocation4], 4294967232 }
 0x2be   :  { %378 = vsyncpa [#allocation3], 1 }
 0x2bf   :  { %379 = vsyncpa [#allocation6], 1 }
 0x2c0   :  { %380 = vsyncpa [#allocation9], 1 }
 0x2c1   :  { %381 = vsyncpa [#allocation4], 1 }

// kernel: tpu_custom_call.1
= control target key start
LH: loop header
LB: loop body
LE: loop exit
PB: predicated region body
PF: predicated region fallthrough
CT: control target
= control target key end

     0   :  { %12 = vsyncpa [#allocation3], 0  ;;  %s646_s0 = inlined_call_operand.hbm [shape: f32[2,64], index: 0, kind: input, shape index: {}]   ;;  %s647_s1 = inlined_call_operand.hbm [shape: f32[64,64], index: 1, kind: input, shape index: {}]   ;;  %s648_s2 = inlined_call_operand.vmem [shape: f32[1,64], index: 2, kind: input, shape index: {}]   ;;  %s649_s3 = inlined_call_operand.hbm [shape: f32[64,64], index: 3, kind: input, shape index: {}]   ;;  %s650_s4 = inlined_call_operand.vmem [shape: f32[1,64], index: 4, kind: input, shape index: {}]   ;;  %s651_s5 = inlined_call_operand.hbm [shape: f32[64,256], index: 5, kind: input, shape index: {}]   ;;  %s652_s6 = inlined_call_operand.vmem [shape: f32[1,256], index: 6, kind: input, shape index: {}]   ;;  %s653_s7 = inlined_call_operand.hbm [shape: f32[2,256], index: 7, kind: output, shape index: {}]  }
   0x1   :  { %13 = vsyncpa [#allocation6], 0 }
   0x2   :  { %14 = vsyncpa [#allocation9], 0 }
   0x3   :  { %15 = vsyncpa [#allocation4], 0  ;;  %s568_s24 = smov [#allocation5]  }
   0x4   :  { %s31_s25 = sshll.u32 %s568_s24, 4  ;;  %s32_s25 = int_to_ptr.vmem [resolvable:$true] %s31_s25 }
   0x5   :  { %s468_s26 = scalar_lea.vmem %s32_s25, 1024  ;;  %p473_p1 = scmp.lt.s32.totalorder %s32_s25, %s32_s25 }
   0x6   :  { %p469_p0 = scmp.ne.s32.totalorder %s32_s25, %s468_s26  ;;  %p474_p2 = scmp.lt.s32.totalorder %s468_s26, %s468_s26 }
   0x8   :  { %p475_p3 = por %p474_p2, %p473_p1 }
   0xa   :  { %p476_p4 = pnand %p475_p3, %p469_p0 }
   0xc   :  { %479 = shalt.err (!%p476_p4)
}
   0xd   :  { %s569_s27 = smov 128   ;;  %s570_s28 = smov 8  }
   0xe   :  { %37 = dma.hbm_to_vmem [thread:$0]  %s647_s1, 1024, %s32_s25, [#allocation6], %s569_s27, %s569_s27, %s570_s28  }
   0xf   :  { %s571_s8 = smov [#allocation2]   ;;  %s572_s10 = smov [#allocation7]  }
  0x10   :  { %s22_s9 = sshll.u32 %s571_s8, 4  ;;  %s45_s11 = sshll.u32 %s572_s10, 4  ;;  %s23_s9 = int_to_ptr.vmem [resolvable:$true] %s22_s9  ;;  %s46_s11 = int_to_ptr.vmem [resolvable:$true] %s45_s11 }
  0x11   :  { %s488_s12 = scalar_lea.vmem %s23_s9, 32  ;;  %p493_p6 = scmp.lt.s32.totalorder %s23_s9, %s23_s9 }
  0x12   :  { %p489_p5 = scmp.ne.s32.totalorder %s23_s9, %s488_s12  ;;  %p494_p7 = scmp.lt.s32.totalorder %s488_s12, %s488_s12 }
  0x14   :  { %p495_p8 = por %p494_p7, %p493_p6 }
  0x16   :  { %p496_p9 = pnand %p495_p8, %p489_p5 }
  0x18   :  { %499 = shalt.err (!%p496_p9)
}
  0x19   :  { %25 = dma.hbm_to_vmem [thread:$0]  %s646_s0, 32, %s23_s9, [#allocation3]  }
  0x1a   :  { %s508_s15 = scalar_lea.vmem %s46_s11, 1024  ;;  %p513_p11 = scmp.lt.s32.totalorder %s46_s11, %s46_s11 }
  0x1b   :  { %p509_p10 = scmp.ne.s32.totalorder %s46_s11, %s508_s15  ;;  %p514_p12 = scmp.lt.s32.totalorder %s508_s15, %s508_s15 }
  0x1d   :  { %p515_p13 = por %p514_p12, %p513_p11 }
  0x1f   :  { %p516_p0 = pnand %p515_p13, %p509_p10 }
  0x21   :  { %519 = shalt.err (!%p516_p0)
}
  0x22   :  { %51 = dma.hbm_to_vmem [thread:$0]  %s649_s3, 1024, %s46_s11, [#allocation6], %s569_s27, %s569_s27, %s570_s28  }
  0x23   :  { %s573_s17 = smov [#allocation8]  }
  0x24   :  { %s59_s18 = sshll.u32 %s573_s17, 4  ;;  %s60_s18 = int_to_ptr.vmem [resolvable:$true] %s59_s18 }
  0x25   :  { %s528_s19 = scalar_lea.vmem %s60_s18, 2048  ;;  %p533_p2 = scmp.lt.s32.totalorder %s60_s18, %s60_s18 }
  0x26   :  { %p529_p1 = scmp.ne.s32.totalorder %s60_s18, %s528_s19  ;;  %p534_p3 = scmp.lt.s32.totalorder %s528_s19, %s528_s19 }
  0x28   :  { %p535_p4 = por %p534_p3, %p533_p2 }
  0x2a   :  { %p536_p5 = pnand %p535_p4, %p529_p1 }
  0x2c   :  { %539 = shalt.err (!%p536_p5)
}
  0x2d   :  { %s574_s0 = smov 256   ;;  %s575_s20 = smov 16  }
  0x2e   :  { %65 = dma.hbm_to_vmem [thread:$0]  %s651_s5, 2048, %s60_s18, [#allocation9], %s574_s0, %s574_s0, %s575_s20  }
  0x2f   :  { %560 = dma.done.wait [#allocation3], 32  }
  0x30   :  { %561 = vsyncadd [#allocation3], 4294967264 }
  0x31   :  { %562 = dma.done.wait [#allocation6], 2048  }
  0x32   :  { %563 = vsyncadd [#allocation6], 4294965248 }
  0x33   :  { %564 = dma.done.wait [#allocation9], 2048  }
  0x34   :  { %565 = vsyncadd [#allocation9], 4294965248  ;;  %v576_v0 = vmov 0.0   ;;  %vm577_vm0 = vmmov 0   ;;  %v88_v1 = vld [vmem:[#allocation5 + $0x38] sm:$0xff]  ;;  %v87_v2 = vld [vmem:[#allocation5 + $0x30] sm:$0xff]  ;;  %v278_v44 = vlaneseq }
  0x35   :  { %405 = vmatprep.subr.mxu0 %v576_v0  ;;  %421 = vmatprep.mubr.msk.f32.mxu0 %vm577_vm0, %v576_v0  ;;  %v86_v3 = vld [vmem:[#allocation5 + $0x28] sm:$0xff]  ;;  %v85_v4 = vld [vmem:[#allocation5 + $0x20] sm:$0xff]  ;;  %v84_v5 = vld [vmem:[#allocation5 + $0x18] sm:$0xff]  ;;  %vm96_vm1 = vcmask 523264  }
  0x36   :  { %424 = vmatprep.subr.mxu1 %v576_v0  ;;  %440 = vmatprep.mubr.msk.f32.mxu1 %vm577_vm0, %v576_v0  ;;  %v83_v6 = vld [vmem:[#allocation5 + $0x10] sm:$0xff]  ;;  %v82_v7 = vld [vmem:[#allocation5 + $0x8] sm:$0xff]  ;;  %v81_v8 = vld [vmem:[#allocation5] sm:$0xff]  ;;  %v279_v45 = vshrl.u32 %v278_v44, 7 }
  0x37   :  { %406 = vmatpush3.msra.mxu0 %v88_v1  ;;  %v80_v9 = vld [vmem:[#allocation2] sm:$0x3]  ;;  %v177_v11 = vld [vmem:[#allocation7 + $0x30] sm:$0xff]  ;;  %v176_v12 = vld [vmem:[#allocation7 + $0x28] sm:$0xff] }
  0x38   :  { %407 = vmatprep.subr.mxu0 %v576_v0  ;;  %v178_v10 = vld [vmem:[#allocation7 + $0x38] sm:$0xff]  ;;  %v175_v13 = vld [vmem:[#allocation7 + $0x20] sm:$0xff]  ;;  %v173_v15 = vld [vmem:[#allocation7 + $0x10] sm:$0xff]  ;;  %v280_v46 = vsub.s32 0, %v279_v45  ;;  %v284_v48 = vsub.s32 1, %v279_v45 }
  0x39   :  { %408 = vmatpush3.msra.mxu0 %v87_v2  ;;  %425 = vmatpush3.msra.mxu1 %v178_v10  ;;  %v174_v14 = vld [vmem:[#allocation7 + $0x18] sm:$0xff]  ;;  %v172_v16 = vld [vmem:[#allocation7 + $0x8] sm:$0xff]  ;;  %v171_v17 = vld [vmem:[#allocation7] sm:$0xff] }
  0x3a   :  { %409 = vmatprep.subr.mxu0 %v576_v0  ;;  %426 = vmatprep.subr.mxu1 %v576_v0  ;;  %v382_v18 = vld [vmem:[%s648_s2] ss:$0 sm:$0xff]  ;;  %v274_v24 = vld [vmem:[#allocation8 + $0x70] sm:$0xff]  ;;  %v273_v25 = vld [vmem:[#allocation8 + $0x68] sm:$0xff] }
  0x3b   :  { %410 = vmatpush3.msra.mxu0 %v86_v3  ;;  %427 = vmatpush3.msra.mxu1 %v177_v11  ;;  %v275_v23 = vld [vmem:[#allocation8 + $0x78] sm:$0xff]  ;;  %v272_v26 = vld [vmem:[#allocation8 + $0x60] sm:$0xff]  ;;  %v270_v28 = vld [vmem:[#allocation8 + $0x50] sm:$0xff] }
  0x3c   :  { %411 = vmatprep.subr.mxu0 %v576_v0  ;;  %428 = vmatprep.subr.mxu1 %v576_v0  ;;  %v271_v27 = vld [vmem:[#allocation8 + $0x58] sm:$0xff]  ;;  %v269_v29 = vld [vmem:[#allocation8 + $0x48] sm:$0xff]  ;;  %v268_v30 = vld [vmem:[#allocation8 + $0x40] sm:$0xff] }
  0x3d   :  { %412 = vmatpush3.msra.mxu0 %v85_v4  ;;  %429 = vmatpush3.msra.mxu1 %v176_v12  ;;  %v267_v31 = vld [vmem:[#allocation8 + $0x38] sm:$0xff]  ;;  %v266_v32 = vld [vmem:[#allocation8 + $0x30] sm:$0xff]  ;;  %v265_v33 = vld [vmem:[#allocation8 + $0x28] sm:$0xff] }
  0x3e   :  { %413 = vmatprep.subr.mxu0 %v576_v0  ;;  %430 = vmatprep.subr.mxu1 %v576_v0  ;;  %v264_v34 = vld [vmem:[#allocation8 + $0x20] sm:$0xff]  ;;  %v263_v35 = vld [vmem:[#allocation8 + $0x18] sm:$0xff]  ;;  %v262_v36 = vld [vmem:[#allocation8 + $0x10] sm:$0xff] }
  0x3f   :  { %414 = vmatpush3.msra.mxu0 %v84_v5  ;;  %431 = vmatpush3.msra.mxu1 %v175_v13  ;;  %v261_v37 = vld [vmem:[#allocation8 + $0x8] sm:$0xff]  ;;  %v260_v38 = vld [vmem:[#allocation8] sm:$0xff]  ;;  %v384_v39 = vld [vmem:[%s650_s4] ss:$0 sm:$0xff]  ;;  %s578_s4 = smov [#allocation10]  }
  0x40   :  { %415 = vmatprep.subr.mxu0 %v576_v0  ;;  %432 = vmatprep.subr.mxu1 %v576_v0  ;;  %v276_v47 = vld [vmem:[%s652_s6] sm:$0x3]  ;;  %s371_s26 = sshll.u32 %s578_s4, 4  ;;  %s372_s26 = int_to_ptr.vmem [resolvable:$true] %s371_s26 }
  0x41   :  { %416 = vmatpush3.msra.mxu0 %v83_v6  ;;  %433 = vmatpush3.msra.mxu1 %v174_v14  ;;  %v281_v49 = vrot.slane %v276_v47, %v280_v46  ;;  %v285_v50 = vrot.slane %v276_v47, %v284_v48  ;;  %s540_s27 = scalar_lea.vmem %s372_s26, 64  ;;  %p545_p7 = scmp.lt.s32.totalorder %s372_s26, %s372_s26 }
  0x42   :  { %417 = vmatprep.subr.mxu0 %v576_v0  ;;  %434 = vmatprep.subr.mxu1 %v576_v0  ;;  %p541_p6 = scmp.ne.s32.totalorder %s372_s26, %s540_s27  ;;  %p546_p8 = scmp.lt.s32.totalorder %s540_s27, %s540_s27 }
  0x43   :  { %418 = vmatpush3.msra.mxu0 %v82_v7  ;;  %435 = vmatpush3.msra.mxu1 %v173_v15 }
  0x44   :  { %419 = vmatprep.subr.mxu0 %v576_v0  ;;  %436 = vmatprep.subr.mxu1 %v576_v0  ;;  %p547_p9 = por %p546_p8, %p545_p7 }
  0x45   :  { %420 = vmatpush3.msra.mxu0 %v81_v8  ;;  %437 = vmatpush3.msra.mxu1 %v172_v16 }
  0x46   :  { %422 = vmatmul.mubr.msk.f32.vlgmr.msra.gmra.mxu0 %vm96_vm1, %v80_v9  ;;  %438 = vmatprep.subr.mxu1 %v576_v0  ;;  %p548_p10 = pnand %p547_p9, %p541_p6 }
  0x47   :  { %355 = vmatprep.mubr.f32.mxu0 %v576_v0  ;;  %439 = vmatpush3.msra.mxu1 %v171_v17 }
  0x48   :  { %307 = vmatprep.subr.mxu0 %v275_v23 }
  0x49   :  { %308 = vmatpush1.msra.mxu0 %v274_v24 }
  0x4a   :  { %309 = vmatprep.subr.mxu0 %v273_v25 }
  0x4b   :  { %310 = vmatpush1.msra.mxu0 %v272_v26 }
  0x4c   :  { %311 = vmatprep.subr.mxu0 %v271_v27 }
  0x4d   :  { %312 = vmatpush1.msra.mxu0 %v270_v28 }
  0x4e   :  { %313 = vmatprep.subr.mxu0 %v269_v29 }
  0x4f   :  { %314 = vmatpush1.msra.mxu0 %v268_v30 }
  0x50   :  { %315 = vmatprep.subr.mxu0 %v267_v31 }
  0x51   :  { %316 = vmatpush1.msra.mxu0 %v266_v32 }
  0x52   :  { %317 = vmatprep.subr.mxu0 %v265_v33 }
  0x53   :  { %318 = vmatpush1.msra.mxu0 %v264_v34 }
  0x54   :  { %319 = vmatprep.subr.mxu0 %v263_v35 }
  0x55   :  { %320 = vmatpush1.msra.mxu0 %v262_v36 }
  0x56   :  { %321 = vmatprep.subr.mxu0 %v261_v37 }
  0x57   :  { %322 = vmatpush1.msra.mxu0 %v260_v38 }
 0x106   :  { %v166_v19 = vpop.f32.mrf.mxu0 }
 0x107   :  { %v167_v20 = vadd.f32 %v382_v18, %v166_v19 }
 0x108   :  { %v423_v21 = vpop.f32.mrf.mxu0 }
 0x109   :  { %454 = vtanh.f32 %v167_v20 }
 0x116   :  { %v455_v22 = vpop.eup %454 }
 0x117   :  { %441 = vmatmul.mubr.msk.f32.vlgmr.msra.gmra.mxu1 %vm96_vm1, %v455_v22 }
 0x1d7   :  { %v255_v40 = vpop.f32.mrf.mxu1 }
 0x1d8   :  { %v256_v41 = vadd.f32 %v384_v39, %v255_v40 }
 0x1d9   :  { %v442_v42 = vpop.f32.mrf.mxu1 }
 0x1da   :  { %456 = vtanh.f32 %v256_v41 }
 0x1e7   :  { %v457_v43 = vpop.eup %456 }
 0x1e8   :  { %386 = vmatmul.mubr.msk.f32.vlgmr.msra.gmra.mxu0 %vm96_vm1, %v457_v43 }
 0x2a8   :  { %v357_v51 = vpop.f32.mrf.mxu0 }
 0x2a9   :  { %v358_v52 = vadd.f32 %v357_v51, %v281_v49 }
 0x2aa   :  { %v359_v53 = vpop.f32.mrf.mxu0 }
 0x2ab   :  { %458 = vtanh.f32 %v358_v52  ;;  %v360_v54 = vadd.f32 %v359_v53, %v285_v50 }
 0x2ad   :  { %364 = vst [vmem:[#allocation10 + $0x2] sm:$0x3] %v360_v54 }
 0x2b8   :  { %v459_v55 = vpop.eup %458 }
 0x2b9   :  { %363 = vst [vmem:[#allocation10] sm:$0x3] %v459_v55 }
 0x2ba   :  { %551 = shalt.err (!%p548_p10)
}
 0x2bb   :  { %374 = dma.vmem_to_hbm [thread:$0]  %s372_s26, 64, %s653_s7, [#allocation4]  }
 0x2bc   :  { %566 = dma.done.wait [#allocation4], 64  }
 0x2bd   :  { %567 = vsyncadd [#allocation4], 4294967232 }
 0x2be   :  { %378 = vsyncpa [#allocation3], 1 }
 0x2bf   :  { %379 = vsyncpa [#allocation6], 1 }
 0x2c0   :  { %380 = vsyncpa [#allocation9], 1 }
 0x2c1   :  { %381 = vsyncpa [#allocation4], 1 }

</bundles_post_ra>
